<compile_context>
chip_gen: v6e
topology: v6e:2x2x1
jax: 0.10.0
libtpu: 0.0.40
codegen_flags: <defaults>
</compile_context>

<pallas_src>
import jax
import jax.numpy as jnp
from jax.experimental import pallas as pl
from jax.experimental.pallas import tpu as pltpu

_BN_EPS = 1e-5
_VMEM_LIMIT = 32 * 1024 * 1024  # explicit (v5e default scoped VMEM is only 16 MiB)


def _banded_weights(w, W, d):
    """Fold the 3 kx taps (and the W-boundary zero padding) into banded weights.

    w: (3, 3, Cin, Cout) -> (3, W*Cin, W*Cout), one band per ky tap, with
    band[ky, j*Cin + ci, wo*Cout + co] = w[ky, kx, ci, co] iff j == wo + (kx-1)*d
    and 0 <= j < W (else 0).  A dot of an (H, W*Cin) image slab against one band
    is the full 1-D dilated conv over W for that ky tap.
    """
    Cin, Cout = w.shape[2], w.shape[3]
    j = jnp.arange(W)[None, :, None]
    wo = jnp.arange(W)[None, None, :]
    kx = jnp.arange(3)[:, None, None]
    sel = (j == wo + (kx - 1) * d).astype(w.dtype)              # (3, W, W)
    band = jnp.einsum("kjw,ykio->yjiwo", sel, w)                # (3, W, Cin, W, Cout)
    return band.reshape(3, W * Cin, W * Cout)


def _make_conv_kernel(H, W, Cin, Cout, d):
    WC_in = W * Cin

    def kernel(x_ref, wb_ref, conv_ref, stat_ref):
        x = x_ref[0]                                            # (H, W*Cin) bf16
        zrow = jnp.zeros((d, WC_in), x.dtype)
        # Row-shifted copies built in vregs (sublane concat + zero rows), no
        # VMEM staging copy: x_up[h] = x[h-d], x_dn[h] = x[h+d], with the d
        # out-of-range rows being the conv's H zero padding.
        x_up = jnp.concatenate([zrow, x[:H - d, :]], axis=0)
        x_dn = jnp.concatenate([x[d:, :], zrow], axis=0)

        # 3 banded MXU matmuls (one per ky tap), K = W*Cin, bf16 in / f32 acc.
        acc = jnp.dot(x, wb_ref[1], preferred_element_type=jnp.float32)
        acc = acc + jnp.dot(x_up, wb_ref[0], preferred_element_type=jnp.float32)
        acc = acc + jnp.dot(x_dn, wb_ref[2], preferred_element_type=jnp.float32)

        # bf16 intermediate writeback (halves the inter-pass HBM traffic).
        conv_ref[0] = acc.astype(conv_ref.dtype)
        # Per-image BatchNorm partials (sum / sum of squares) from the f32
        # accumulator, merged into a single (2, W*Cout) store.
        stat_ref[0] = jnp.concatenate(
            [jnp.sum(acc, axis=0, keepdims=True),
             jnp.sum(acc * acc, axis=0, keepdims=True)], axis=0)

    return kernel


def _bn_relu_kernel(c_ref, scale_ref, shift_ref, o_ref):
    # Fused per-channel scale + shift + ReLU on the lane-dense conv slab.
    # Load bf16, upcast, compute in f32 (f32 VPU path works on all of
    # v5e/v6e/v7x; bf16 compute would only help vreg pressure on v6e/v7x).
    c = c_ref[0].astype(jnp.float32)
    o_ref[0] = jnp.maximum(c * scale_ref[...] + shift_ref[...], 0.0)


def rebnconv_slab(x_slab, w, gamma, beta, dirate=1):
    """REBNCONV on a lane-dense slab.

    x_slab: (N, H, W*Cin) NHWC-flattened activations (channels fastest).
    w: (3, 3, Cin, Cout). Returns (N, H, W*Cout) float32 slab.
    Chained REBNCONV blocks should call this directly to avoid per-block
    NCHW<->NHWC transposes (each one is a full HBM round trip).
    """
    N, H, WC_in = x_slab.shape
    Cin, Cout = w.shape[2], w.shape[3]
    W = WC_in // Cin
    d = int(dirate)
    WC_out = W * Cout

    x = x_slab.astype(jnp.bfloat16)
    wb = _banded_weights(w.astype(jnp.float32), W, d).astype(jnp.bfloat16)

    cp_conv = pltpu.CompilerParams(
        dimension_semantics=("parallel",),
        vmem_limit_bytes=_VMEM_LIMIT,
    )

    # Pass 1: banded conv + BN partials. Note: the banded weight block has a
    # constant index_map, so it is fetched once and stays VMEM-resident across
    # the grid (at real band sizes it should additionally be single-buffered).
    conv, stats = pl.pallas_call(
        _make_conv_kernel(H, W, Cin, Cout, d),
        out_shape=(
            jax.ShapeDtypeStruct((N, H, WC_out), jnp.bfloat16),
            jax.ShapeDtypeStruct((N, 2, WC_out), jnp.float32),
        ),
        grid_spec=pltpu.PrefetchScalarGridSpec(
            num_scalar_prefetch=0,
            grid=(N,),
            in_specs=[
                pl.BlockSpec((1, H, WC_in), lambda n: (n, 0, 0)),
                pl.BlockSpec((3, WC_in, WC_out), lambda n: (0, 0, 0)),
            ],
            out_specs=[
                pl.BlockSpec((1, H, WC_out), lambda n: (n, 0, 0)),
                pl.BlockSpec((1, 2, WC_out), lambda n: (n, 0, 0)),
            ],
        ),
        compiler_params=cp_conv,
    )(x, wb)

    # Training-mode BN statistics over N*H*W per channel (biased variance),
    # folded into one scale+shift per channel (tiny; done in plain XLA).
    count = N * H * W
    st = stats.reshape(N, 2, W, Cout).sum(axis=(0, 2))          # (2, Cout)
    mean = st[0] / count
    var = jnp.maximum(st[1] / count - mean * mean, 0.0)
    scale = gamma * jax.lax.rsqrt(var + _BN_EPS)
    shift = beta - mean * scale
    # Tile per-channel scale/shift into the lane-dense (w*Cout + c) layout.
    scale_row = jnp.broadcast_to(scale[None, :], (W, Cout)).reshape(1, WC_out)
    shift_row = jnp.broadcast_to(shift[None, :], (W, Cout)).reshape(1, WC_out)

    # Pass 2: fused scale+shift+ReLU, tiled over (batch, row-tiles), both
    # "parallel" so v7x's 2 TCs get work even at batch 1 on real heights.
    # Row tiles are multiples of 16 (bf16 sublane packing); at real U2Net
    # heights pick the largest tile that still double-buffers in VMEM.
    Ht = H if (H % 16) or (H <= 128) else 128
    cp_bn = pltpu.CompilerParams(
        dimension_semantics=("parallel", "parallel"),
        vmem_limit_bytes=_VMEM_LIMIT,
    )

    y = pl.pallas_call(
        _bn_relu_kernel,
        out_shape=jax.ShapeDtypeStruct((N, H, WC_out), jnp.float32),
        grid_spec=pltpu.PrefetchScalarGridSpec(
            num_scalar_prefetch=0,
            grid=(N, H // Ht),
            in_specs=[
                pl.BlockSpec((1, Ht, WC_out), lambda n, h: (n, h, 0)),
                pl.BlockSpec((1, WC_out), lambda n, h: (0, 0)),
                pl.BlockSpec((1, WC_out), lambda n, h: (0, 0)),
            ],
            out_specs=pl.BlockSpec((1, Ht, WC_out), lambda n, h: (n, h, 0)),
        ),
        compiler_params=cp_bn,
    )(conv, scale_row.astype(jnp.float32), shift_row.astype(jnp.float32))

    return y


def rebnconv(x_nchw, w, b, gamma, beta, dirate=1):
    """REBNCONV forward (PyTorch NCHW interface).

    Conv2d(Cin->Cout, 3x3, padding=dirate, dilation=dirate) -> BatchNorm2d
    (training-mode batch statistics, eps=1e-5) -> ReLU.
    x_nchw: (N, Cin, H, W) float32; w: (3, 3, Cin, Cout). Returns (N, Cout, H, W).
    """
    del b  # Conv bias cancels exactly under the training-mode BN mean subtraction.
    N, Cin, H, W = x_nchw.shape
    Cout = w.shape[-1]
    x_slab = jnp.transpose(x_nchw, (0, 2, 3, 1)).reshape(N, H, W * Cin)
    y_slab = rebnconv_slab(x_slab, w, gamma, beta, dirate=dirate)
    return jnp.transpose(y_slab.reshape(N, H, W, Cout), (0, 3, 1, 2))


def rebnconv_reference(x_nchw, w, b, gamma, beta, dirate=1):
    """Pure-JAX reference (f32): dilated conv + bias -> batch-stat BN -> ReLU."""
    d = int(dirate)
    x = jnp.transpose(x_nchw, (0, 2, 3, 1))
    conv = jax.lax.conv_general_dilated(
        x, w, window_strides=(1, 1), padding=[(d, d), (d, d)],
        rhs_dilation=(d, d), dimension_numbers=("NHWC", "HWIO", "NHWC")) + b
    mean = conv.mean(axis=(0, 1, 2))
    var = conv.var(axis=(0, 1, 2))
    y = (conv - mean) * (gamma * jax.lax.rsqrt(var + _BN_EPS)) + beta
    return jnp.transpose(jnp.maximum(y, 0.0), (0, 3, 1, 2))


if __name__ == "__main__":
    key = jax.random.PRNGKey(0)
    N, H, W = 2, 16, 16
    in_ch, out_ch = 4, 8

    k = jax.random.split(key, 6)
    w1 = jax.random.normal(k[0], (3, 3, in_ch, out_ch), jnp.float32) / jnp.sqrt(9.0 * in_ch)
    b1 = 0.1 * jax.random.normal(k[1], (out_ch,), jnp.float32)
    g1 = 1.0 + 0.05 * jax.random.normal(k[2], (out_ch,), jnp.float32)
    bt1 = 0.05 * jax.random.normal(k[3], (out_ch,), jnp.float32)
    x = jax.random.normal(k[4], (N, in_ch, H, W), jnp.float32)
    w2 = jax.random.normal(k[5], (3, 3, out_ch, out_ch), jnp.float32) / jnp.sqrt(9.0 * out_ch)

    fwd = jax.jit(rebnconv, static_argnames=("dirate",))

    # REBNCONV with dirate=1.
    out = jax.block_until_ready(fwd(x, w1, b1, g1, bt1, dirate=1))
    ref = rebnconv_reference(x, w1, b1, g1, bt1, dirate=1)
    assert out.shape == (N, out_ch, H, W), out.shape
    assert bool(jnp.all(jnp.isfinite(out)))
    assert bool(jnp.allclose(out, ref, atol=1e-1, rtol=1e-1)), \
        float(jnp.max(jnp.abs(out - ref)))

    # REBNCONV with dirate=2 (dilated variant used inside RSU blocks).
    out2 = jax.block_until_ready(fwd(out, w2, b1, g1, bt1, dirate=2))
    ref2 = rebnconv_reference(out, w2, b1, g1, bt1, dirate=2)
    assert out2.shape == (N, out_ch, H, W), out2.shape
    assert bool(jnp.all(jnp.isfinite(out2)))
    assert bool(jnp.allclose(out2, ref2, atol=1e-1, rtol=1e-1)), \
        float(jnp.max(jnp.abs(out2 - ref2)))

    # Chained lane-dense path: two REBNCONV blocks back-to-back with no
    # NCHW<->NHWC transposes between them (the recommended usage inside RSU).
    @jax.jit
    def chain(x_in):
        s = jnp.transpose(x_in, (0, 2, 3, 1)).reshape(N, H, W * in_ch)
        h1 = rebnconv_slab(s, w1, g1, bt1, dirate=1)
        h2 = rebnconv_slab(h1, w2, g1, bt1, dirate=2)
        return jnp.transpose(h2.reshape(N, H, W, out_ch), (0, 3, 1, 2))

    outc = jax.block_until_ready(chain(x))
    assert bool(jnp.all(jnp.isfinite(outc)))
    assert bool(jnp.allclose(outc, ref2, atol=1e-1, rtol=1e-1)), \
        float(jnp.max(jnp.abs(outc - ref2)))

    print("KERNEL_OK")
</pallas_src>

<mosaic_0001>
module attributes {stable_mosaic.version = 11 : i64} {
  func.func @kernel(%arg0: i32, %arg1: memref<1x16x64xbf16, #tpu.memory_space<vmem>>, %arg2: memref<3x64x128xbf16, #tpu.memory_space<vmem>>, %arg3: memref<1x16x128xbf16, #tpu.memory_space<vmem>>, %arg4: memref<1x2x128xf32, #tpu.memory_space<vmem>>) attributes {dimension_semantics = [#tpu.dimension_semantics<parallel>], iteration_bounds = array<i64: 2>, scalar_prefetch = 0 : i64, scratch_operands = 0 : i64, tpu.core_type = #tpu.core_type<tc>, window_params = [{transform_indices = @transform_0, window_bounds = array<i64: 1, 16, 64>}, {pipeline_mode = #tpu.pipeline_mode<synchronous>, transform_indices = @transform_1, window_bounds = array<i64: 3, 64, 128>}, {transform_indices = @transform_2, window_bounds = array<i64: 1, 16, 128>}, {transform_indices = @transform_3, window_bounds = array<i64: 1, 2, 128>}]} {
    %c0 = arith.constant 0 : index
    %c0_0 = arith.constant 0 : index
    %c0_1 = arith.constant 0 : index
    %0 = vector.load %arg1[%c0, %c0_0, %c0_1] : memref<1x16x64xbf16, #tpu.memory_space<vmem>>, vector<1x16x64xbf16>
    %1 = vector.shape_cast %0 : vector<1x16x64xbf16> to vector<16x64xbf16>
    %cst = arith.constant 0.000000e+00 : bf16
    %2 = vector.broadcast %cst : bf16 to vector<1x64xbf16>
    %3 = vector.extract_strided_slice %1 {offsets = [0, 0], sizes = [15, 64], strides = [1, 1]} : vector<16x64xbf16> to vector<15x64xbf16>
    %4 = tpu.concatenate %2, %3 in 0 : vector<1x64xbf16>, vector<15x64xbf16> -> vector<16x64xbf16>
    %5 = vector.extract_strided_slice %1 {offsets = [1, 0], sizes = [15, 64], strides = [1, 1]} : vector<16x64xbf16> to vector<15x64xbf16>
    %6 = tpu.concatenate %5, %2 in 0 : vector<15x64xbf16>, vector<1x64xbf16> -> vector<16x64xbf16>
    %c1 = arith.constant 1 : index
    %c0_2 = arith.constant 0 : index
    %c0_3 = arith.constant 0 : index
    %7 = vector.load %arg2[%c1, %c0_2, %c0_3] : memref<3x64x128xbf16, #tpu.memory_space<vmem>>, vector<1x64x128xbf16>
    %8 = vector.shape_cast %7 : vector<1x64x128xbf16> to vector<64x128xbf16>
    %cst_4 = arith.constant dense<0.000000e+00> : vector<16x128xf32>
    %9 = tpu.matmul %1, %8, %cst_4 {dimension_numbers = #tpu.dot_dimension_numbers<[1], [0], [0], [1], [0, 0, 1, 1], [], []>} : vector<16x64xbf16>, vector<64x128xbf16>, vector<16x128xf32> -> vector<16x128xf32>
    %c0_5 = arith.constant 0 : index
    %c0_6 = arith.constant 0 : index
    %c0_7 = arith.constant 0 : index
    %10 = vector.load %arg2[%c0_5, %c0_6, %c0_7] : memref<3x64x128xbf16, #tpu.memory_space<vmem>>, vector<1x64x128xbf16>
    %11 = vector.shape_cast %10 : vector<1x64x128xbf16> to vector<64x128xbf16>
    %cst_8 = arith.constant dense<0.000000e+00> : vector<16x128xf32>
    %12 = tpu.matmul %4, %11, %cst_8 {dimension_numbers = #tpu.dot_dimension_numbers<[1], [0], [0], [1], [0, 0, 1, 1], [], []>} : vector<16x64xbf16>, vector<64x128xbf16>, vector<16x128xf32> -> vector<16x128xf32>
    %13 = arith.addf %9, %12 : vector<16x128xf32>
    %c2 = arith.constant 2 : index
    %c0_9 = arith.constant 0 : index
    %c0_10 = arith.constant 0 : index
    %14 = vector.load %arg2[%c2, %c0_9, %c0_10] : memref<3x64x128xbf16, #tpu.memory_space<vmem>>, vector<1x64x128xbf16>
    %15 = vector.shape_cast %14 : vector<1x64x128xbf16> to vector<64x128xbf16>
    %cst_11 = arith.constant dense<0.000000e+00> : vector<16x128xf32>
    %16 = tpu.matmul %6, %15, %cst_11 {dimension_numbers = #tpu.dot_dimension_numbers<[1], [0], [0], [1], [0, 0, 1, 1], [], []>} : vector<16x64xbf16>, vector<64x128xbf16>, vector<16x128xf32> -> vector<16x128xf32>
    %17 = arith.addf %13, %16 : vector<16x128xf32>
    %18 = arith.truncf %17 : vector<16x128xf32> to vector<16x128xbf16>
    %c0_12 = arith.constant 0 : index
    %c0_13 = arith.constant 0 : index
    %c0_14 = arith.constant 0 : index
    %19 = vector.load %arg3[%c0_12, %c0_13, %c0_14] : memref<1x16x128xbf16, #tpu.memory_space<vmem>>, vector<1x16x128xbf16>
    %20 = vector.shape_cast %19 : vector<1x16x128xbf16> to vector<16x128xbf16>
    %21 = vector.shape_cast %18 : vector<16x128xbf16> to vector<1x16x128xbf16>
    tpu.vector_store %arg3[%c0_12, %c0_13, %c0_14], %21 {strides = array<i32>} : memref<1x16x128xbf16, #tpu.memory_space<vmem>>, vector<1x16x128xbf16>,
    %cst_15 = arith.constant dense<0.000000e+00> : vector<128xf32>
    %22 = vector.multi_reduction <add>, %17, %cst_15 [0] : vector<16x128xf32> to vector<128xf32>
    %23 = vector.shape_cast %22 : vector<128xf32> to vector<1x128xf32>
    %24 = arith.mulf %17, %17 : vector<16x128xf32>
    %cst_16 = arith.constant dense<0.000000e+00> : vector<128xf32>
    %25 = vector.multi_reduction <add>, %24, %cst_16 [0] : vector<16x128xf32> to vector<128xf32>
    %26 = vector.shape_cast %25 : vector<128xf32> to vector<1x128xf32>
    %27 = tpu.concatenate %23, %26 in 0 : vector<1x128xf32>, vector<1x128xf32> -> vector<2x128xf32>
    %c0_17 = arith.constant 0 : index
    %c0_18 = arith.constant 0 : index
    %c0_19 = arith.constant 0 : index
    %28 = vector.load %arg4[%c0_17, %c0_18, %c0_19] : memref<1x2x128xf32, #tpu.memory_space<vmem>>, vector<1x2x128xf32>
    %29 = vector.shape_cast %28 : vector<1x2x128xf32> to vector<2x128xf32>
    %30 = vector.shape_cast %27 : vector<2x128xf32> to vector<1x2x128xf32>
    tpu.vector_store %arg4[%c0_17, %c0_18, %c0_19], %30 {strides = array<i32>} : memref<1x2x128xf32, #tpu.memory_space<vmem>>, vector<1x2x128xf32>,
    return
  }
  func.func @transform_0(%arg0: i32) -> (i32, i32, i32) {
    %c0_i32 = arith.constant 0 : i32
    %c0_i32_0 = arith.constant 0 : i32
    %c0_i32_1 = arith.constant 0 : i32
    return %arg0, %c0_i32, %c0_i32_0 : i32, i32, i32
  }
  func.func @transform_1(%arg0: i32) -> (i32, i32, i32) {
    %c0_i32 = arith.constant 0 : i32
    %c0_i32_0 = arith.constant 0 : i32
    %c0_i32_1 = arith.constant 0 : i32
    %c0_i32_2 = arith.constant 0 : i32
    return %c0_i32, %c0_i32_0, %c0_i32_1 : i32, i32, i32
  }
  func.func @transform_2(%arg0: i32) -> (i32, i32, i32) {
    %c0_i32 = arith.constant 0 : i32
    %c0_i32_0 = arith.constant 0 : i32
    %c0_i32_1 = arith.constant 0 : i32
    return %arg0, %c0_i32, %c0_i32_0 : i32, i32, i32
  }
  func.func @transform_3(%arg0: i32) -> (i32, i32, i32) {
    %c0_i32 = arith.constant 0 : i32
    %c0_i32_0 = arith.constant 0 : i32
    %c0_i32_1 = arith.constant 0 : i32
    return %arg0, %c0_i32, %c0_i32_0 : i32, i32, i32
  }
}

module attributes {stable_mosaic.version = 11 : i64} {
  func.func @_bn_relu_kernel(%arg0: i32, %arg1: i32, %arg2: memref<1x16x128xbf16, #tpu.memory_space<vmem>>, %arg3: memref<1x128xf32, #tpu.memory_space<vmem>>, %arg4: memref<1x128xf32, #tpu.memory_space<vmem>>, %arg5: memref<1x16x128xf32, #tpu.memory_space<vmem>>) attributes {dimension_semantics = [#tpu.dimension_semantics<parallel>, #tpu.dimension_semantics<parallel>], iteration_bounds = array<i64: 2, 1>, scalar_prefetch = 0 : i64, scratch_operands = 0 : i64, tpu.core_type = #tpu.core_type<tc>, window_params = [{transform_indices = @transform_0, window_bounds = array<i64: 1, 16, 128>}, {pipeline_mode = #tpu.pipeline_mode<synchronous>, transform_indices = @transform_1, window_bounds = array<i64: 1, 128>}, {pipeline_mode = #tpu.pipeline_mode<synchronous>, transform_indices = @transform_2, window_bounds = array<i64: 1, 128>}, {transform_indices = @transform_3, window_bounds = array<i64: 1, 16, 128>}]} {
    %c0 = arith.constant 0 : index
    %c0_0 = arith.constant 0 : index
    %c0_1 = arith.constant 0 : index
    %0 = vector.load %arg2[%c0, %c0_0, %c0_1] : memref<1x16x128xbf16, #tpu.memory_space<vmem>>, vector<1x16x128xbf16>
    %1 = vector.shape_cast %0 : vector<1x16x128xbf16> to vector<16x128xbf16>
    %2 = arith.extf %1 : vector<16x128xbf16> to vector<16x128xf32>
    %c0_2 = arith.constant 0 : index
    %c0_3 = arith.constant 0 : index
    %3 = vector.load %arg3[%c0_2, %c0_3] : memref<1x128xf32, #tpu.memory_space<vmem>>, vector<1x128xf32>
    %4 = vector.broadcast %3 : vector<1x128xf32> to vector<16x128xf32>
    %5 = arith.mulf %2, %4 : vector<16x128xf32>
    %c0_4 = arith.constant 0 : index
    %c0_5 = arith.constant 0 : index
    %6 = vector.load %arg4[%c0_4, %c0_5] : memref<1x128xf32, #tpu.memory_space<vmem>>, vector<1x128xf32>
    %7 = vector.broadcast %6 : vector<1x128xf32> to vector<16x128xf32>
    %8 = arith.addf %5, %7 : vector<16x128xf32>
    %cst = arith.constant 0.000000e+00 : f32
    %9 = vector.broadcast %cst : f32 to vector<16x128xf32>
    %10 = arith.maximumf %8, %9 : vector<16x128xf32>
    %c0_6 = arith.constant 0 : index
    %c0_7 = arith.constant 0 : index
    %c0_8 = arith.constant 0 : index
    %11 = vector.load %arg5[%c0_6, %c0_7, %c0_8] : memref<1x16x128xf32, #tpu.memory_space<vmem>>, vector<1x16x128xf32>
    %12 = vector.shape_cast %11 : vector<1x16x128xf32> to vector<16x128xf32>
    %13 = vector.shape_cast %10 : vector<16x128xf32> to vector<1x16x128xf32>
    tpu.vector_store %arg5[%c0_6, %c0_7, %c0_8], %13 {strides = array<i32>} : memref<1x16x128xf32, #tpu.memory_space<vmem>>, vector<1x16x128xf32>,
    return
  }
  func.func @transform_0(%arg0: i32, %arg1: i32) -> (i32, i32, i32) {
    %c0_i32 = arith.constant 0 : i32
    %c0_i32_0 = arith.constant 0 : i32
    return %arg0, %arg1, %c0_i32 : i32, i32, i32
  }
  func.func @transform_1(%arg0: i32, %arg1: i32) -> (i32, i32) {
    %c0_i32 = arith.constant 0 : i32
    %c0_i32_0 = arith.constant 0 : i32
    %c0_i32_1 = arith.constant 0 : i32
    return %c0_i32, %c0_i32_0 : i32, i32
  }
  func.func @transform_2(%arg0: i32, %arg1: i32) -> (i32, i32) {
    %c0_i32 = arith.constant 0 : i32
    %c0_i32_0 = arith.constant 0 : i32
    %c0_i32_1 = arith.constant 0 : i32
    return %c0_i32, %c0_i32_0 : i32, i32
  }
  func.func @transform_3(%arg0: i32, %arg1: i32) -> (i32, i32, i32) {
    %c0_i32 = arith.constant 0 : i32
    %c0_i32_0 = arith.constant 0 : i32
    return %arg0, %arg1, %c0_i32 : i32, i32, i32
  }
}

</mosaic_0001>

<bundles_post_ra>
// kernel: rebnconv.2
= control target key start
LH: loop header
LB: loop body
LE: loop exit
PB: predicated region body
PF: predicated region fallthrough
CT: control target
= control target key end

     0   :  { %s715_s12 = smov 0   ;;  %s787_s0 = inlined_call_operand.vmem [shape: bf16[2,16,64], index: 0, kind: input, shape index: {}]   ;;  %s788_s1 = inlined_call_operand.vmem [shape: bf16[3,64,128], index: 1, kind: input, shape index: {}]   ;;  %s789_s2 = inlined_call_operand.vmem [shape: bf16[2,16,128], index: 2, kind: output, shape index: {0}]   ;;  %s790_s3 = inlined_call_operand.vmem [shape: f32[2,2,128], index: 3, kind: output, shape index: {1}]  }
   0x1 LB: > { %s556_s13 = sadd.s32 4294967295, %s691_s12   ;;  %p560_p0 = scmp.ge.s32.totalorder %s691_s12, 1  ;;  %s691_s12 = sphi %s715_s12, %s14_s12  }
   0x2   : > { %p140_p1 = scmp.lt.s32.totalorder %s691_s12, 3 }
   0x4   : > { %p141_p2 = pnand %p560_p0, %p140_p1 }
   0x5   : > { %p168_p3 = scmp.lt.s32.totalorder (!%p141_p2), %s556_s13, 1 }
   0x6   : > { %144 = sbr.rel (%p141_p2) target bundleno = 261 (0x105), region = 28 }
   0xb   : > { %v672_v0 = vld [vmem:[%s788_s1 + $0x18] sm:$0xff]   ;;  %v693_v1 = vmov 0.0   ;;  %v674_v3 = vld [vmem:[%s788_s1 + $0x10] sm:$0xff]   ;;  %vm694_vm0 = vmmov 0   ;;  %s792_s13 = smov (!%p168_p3, %s556_s13), 1  ;;  %v676_v5 = vld [vmem:[%s788_s1 + $0x8] sm:$0xff]  }
   0xc   : > { %626 = vmatprep.subr.bf16.mxu0 %v693_v1  ;;  %638 = vmatprep.subr.bf16.mxu1 %v693_v1  ;;  %v673_v2 = vld [vmem:[%s788_s1 + $0x38] sm:$0xff]   ;;  %v675_v4 = vld [vmem:[%s788_s1 + $0x30] sm:$0xff]   ;;  %s602_s24 = sshll.u32 %s792_s13, 3  ;;  %v677_v6 = vld [vmem:[%s788_s1 + $0x28] sm:$0xff]   ;;  %vm198_vm1 = vcmask 1040384   ;;  %vm250_vm4 = vcmask 523264  }
   0xd   : > { %627 = vmatpush3.bf16.msra.mxu0 %v672_v0  ;;  %634 = vmatprep.mubr.msk.bf16.mxu0 %vm694_vm0, %v693_v1  ;;  %s172_s29 = scalar_lea.vmem %s787_s0, %s602_s24  ;;  %v678_v8 = vld [vmem:[%s788_s1] sm:$0xff]   ;;  %vm199_vm2 = vsmask.f32 256  ;;  %v681_v14 = vld [vmem:[%s788_s1 + $0x58] sm:$0xff]   ;;  %v682_v16 = vld [vmem:[%s788_s1 + $0x50] sm:$0xff]   ;;  %vm205_vm5 = vcmask 1047552   ;;  %s177_s19 = scalar_lea.vmem %s789_s2, %s602_s24 }
   0xe   : > { %639 = vmatpush3.bf16.msra.mxu1 %v673_v2  ;;  %628 = vmatprep.subr.bf16.mxu0 %v693_v1  ;;  %v680_v7 = vld [vmem:[%s172_s29] sm:$0xff]   ;;  %vm200_vm3 = vmand %vm198_vm1, %vm199_vm2  ;;  %v683_v18 = vld [vmem:[%s788_s1 + $0x48] sm:$0xff]   ;;  %vm206_vm6 = vsmask.f32 7424  ;;  %s565_s20 = sshll.u32 %s792_s13, 1 }
   0xf   : > { %640 = vmatprep.subr.bf16.mxu1 %v693_v1  ;;  %646 = vmatprep.mubr.msk.bf16.mxu1 %vm694_vm0, %v693_v1  ;;  %v191_v9 = vshrl.u32 %v680_v7, 16  ;;  %v194_v10 = vshll.u32 %v680_v7, 16  ;;  %v679_v11 = vld [vmem:[%s788_s1 + $0x20] sm:$0xff]   ;;  %vm207_vm7 = vmand %vm205_vm5, %vm206_vm6  ;;  %s181_s23 = scalar_lea.vmem %s790_s3, %s565_s20 }
  0x10   : > { %v684_v19 = vld [vmem:[%s788_s1 + $0x40] sm:$0xff]  }
  0x11   : > { %629 = vmatpush3.bf16.msra.mxu0 %v674_v3  ;;  %v193_v12 = vrot.slane %v191_v9, 7  ;;  %v202_v17 = vrot.slane %v194_v10, 1 }
  0x12   : > { %641 = vmatpush3.bf16.msra.mxu1 %v675_v4  ;;  %630 = vmatprep.subr.bf16.mxu0 %v693_v1 }
  0x13   : > { %642 = vmatprep.subr.bf16.mxu1 %v693_v1  ;;  %v196_v13 = vor.u32 %v194_v10, %v193_v12  ;;  %v203_v20 = vor.u32 %v202_v17, %v191_v9 }
  0x15   : > { %631 = vmatpush3.bf16.msra.mxu0 %v676_v5  ;;  %v201_v15 = vsel %vm200_vm3, 0, %v196_v13  ;;  %v208_v21 = vsel %vm207_vm7, %v203_v20, 0 }
  0x16   : > { %643 = vmatpush3.bf16.msra.mxu1 %v677_v6  ;;  %632 = vmatprep.subr.bf16.mxu0 %v693_v1 }
  0x17   : > { %644 = vmatprep.subr.bf16.mxu1 %v693_v1 }
  0x19   : > { %633 = vmatpush3.bf16.msra.mxu0 %v678_v8 }
  0x1a   : > { %645 = vmatpush3.bf16.msra.mxu1 %v679_v11  ;;  %650 = vmatprep.subr.bf16.mxu0 %v693_v1 }
  0x1c   : > { %635 = vmatmul.mubr.msk.bf16.vlgmr.msra.gmra.mxu0 %vm250_vm4, %v201_v15 }
  0x1d   : > { %647 = vmatmul.mubr.msk.bf16.vlgmr.msra.gmra.mxu1 %vm250_vm4, %v680_v7  ;;  %651 = vmatpush3.bf16.msra.mxu0 %v681_v14 }
  0x1e   : > { %652 = vmatprep.subr.bf16.mxu0 %v693_v1  ;;  %658 = vmatprep.mubr.msk.bf16.mxu0 %vm694_vm0, %v693_v1 }
  0x21   : > { %653 = vmatpush3.bf16.msra.mxu0 %v682_v16 }
  0x22   : > { %654 = vmatprep.subr.bf16.mxu0 %v693_v1 }
  0x25   : > { %655 = vmatpush3.bf16.msra.mxu0 %v683_v18 }
  0x26   : > { %656 = vmatprep.subr.bf16.mxu0 %v693_v1 }
  0x29   : > { %657 = vmatpush3.bf16.msra.mxu0 %v684_v19 }
  0x2c   : > { %659 = vmatmul.mubr.msk.bf16.vlgmr.msra.gmra.mxu0 %vm250_vm4, %v208_v21 }
  0xdc   : > { %v288_v22 = vpop.f32.mrf.mxu0 }
  0xdd   : > { %v355_v23 = vpop.f32.mrf.mxu1 }
  0xde   : > { %v636_v24 = vpop.f32.mrf.mxu0  ;;  %v356_v31 = vadd.f32 %v355_v23, %v288_v22 }
  0xdf   : > { %v648_v25 = vpop.f32.mrf.mxu1 }
  0xe0   : > { %v291_v26 = vpop.f32.mrf.mxu0 }
  0xe1   : > { %v358_v27 = vpop.f32.mrf.mxu1 }
  0xe2   : > { %v637_v28 = vpop.f32.mrf.mxu0  ;;  %v359_v33 = vadd.f32 %v358_v27, %v291_v26 }
  0xe3   : > { %v649_v29 = vpop.f32.mrf.mxu1 }
  0xec   : > { %v432_v30 = vpop.f32.mrf.mxu0 }
  0xed   : > { %v439_v34 = vadd.f32 %v432_v30, %v356_v31 }
  0xee   : > { %v660_v32 = vpop.f32.mrf.mxu0 }
  0xef   : > { %v458_v38 = vmul.f32 %v439_v34, %v439_v34 }
  0xf0   : > { %v435_v35 = vpop.f32.mrf.mxu0 }
  0xf1   : > { %v440_v36 = vadd.f32 %v435_v35, %v359_v33 }
  0xf2   : > { %v661_v37 = vpop.f32.mrf.mxu0 }
  0xf3   : > { %v609_v39 = vpack.c.bf16 %v440_v36, %v439_v34  ;;  %v451_v40 = vadd.f32 %v440_v36, %v439_v34  ;;  %v459_v41 = vmul.f32 %v440_v36, %v440_v36 }
  0xf5   : > { %610 = vst [vmem:[%s177_s19] sm:$0xff] %v609_v39   ;;  %v452_v42 = vrot.slane %v451_v40, 4  ;;  %v460_v43 = vadd.f32 %v459_v41, %v458_v38 }
  0xf7   : > { %v453_v44 = vadd.f32 %v452_v42, %v451_v40  ;;  %v461_v45 = vrot.slane %v460_v43, 4 }
  0xf9   : > { %v454_v46 = vrot.slane %v453_v44, 2  ;;  %v462_v47 = vadd.f32 %v461_v45, %v460_v43 }
  0xfb   : > { %v455_v48 = vadd.f32 %v454_v46, %v453_v44  ;;  %v463_v49 = vrot.slane %v462_v47, 2 }
  0xfd   : > { %v456_v50 = vrot.slane %v455_v48, 1  ;;  %v464_v51 = vadd.f32 %v463_v49, %v462_v47 }
  0xff   : > { %v465_v52 = vrot.slane %v464_v51, 1  ;;  %v457_v53 = vadd.f32 %v456_v50, %v455_v48 }
 0x101   : > { %v466_v54 = vadd.f32 %v465_v52, %v464_v51 }
 0x103   : > { %v468_v55 = vsel %vm198_vm1, %v457_v53, %v466_v54 }
 0x104   : > { %469 = vst [vmem:[%s181_s23] sm:$0x3] %v468_v55 }
 0x105 PF: > { %s14_s12 = sadd.s32 1, %s691_s12  }
 0x106   : > { %p11_p4 = scmp.ge.s32.totalorder %s14_s12, 4  }
 0x108   :  { %13 = sbr.rel (!%p11_p4) target bundleno = 1 (0x1), region = 72 }

// kernel: rebnconv.3
= control target key start
LH: loop header
LB: loop body
LE: loop exit
PB: predicated region body
PF: predicated region fallthrough
CT: control target
= control target key end

     0   :  { %s410_s12 = smov 0   ;;  %s412_s13 = smov 0   ;;  %s446_s0 = inlined_call_operand.vmem [shape: bf16[2,16,128], index: 0, kind: input, shape index: {}]   ;;  %s447_s1 = inlined_call_operand.vmem [shape: f32[1,128], index: 1, kind: input, shape index: {}]   ;;  %s448_s2 = inlined_call_operand.vmem [shape: f32[1,128], index: 2, kind: input, shape index: {}]   ;;  %s449_s3 = inlined_call_operand.vmem [shape: f32[2,16,128], index: 3, kind: output, shape index: {}]  }
   0x1   :  { %s414_s14 = smov 0  }
   0x2 LB: > { %s25_s15 = sadd.s32 1, %s384_s13  ;;  %p327_p0 = scmp.ge.s32.totalorder %s388_s14, 1  ;;  %s388_s14 = sphi %s414_s14, %s13_s14   ;;  %s384_s13 = sphi %s412_s13, %s451_s13   ;;  %s380_s12 = sphi %s410_s12, %s450_s12  }
   0x3   : > { %p27_p1 = scmp.ge.s32.totalorder %s25_s15, 2  ;;  %p158_p2 = scmp.lt.s32.totalorder %s388_s14, 3 }
   0x5   : > { %s453_s15 = smov (%p27_p1, %s25_s15), 0  ;;  %p159_p3 = pnand %p327_p0, %p158_p2 }
   0x6   : > { %p191_p4 = scmp.lt.s32.totalorder (!%p159_p3), %s380_s12, 1 }
   0x7   : > { %162 = sbr.rel (%p159_p3) target bundleno = 25 (0x19), region = 32 }
   0xc   : > { %s455_s12 = smov (!%p191_p4, %s380_s12), 1  ;;  %v332_v1 = vld [vmem:[%s447_s1] ss:$0 sm:$0xff] }
   0xd   : > { %s336_s16 = sshll.u32 %s455_s12, 3  ;;  %v333_v4 = vld [vmem:[%s448_s2] ss:$0 sm:$0xff]  ;;  %s337_s24 = sshll.u32 %s455_s12, 4 }
   0xe   : > { %s198_s19 = scalar_lea.vmem %s446_s0, %s336_s16  ;;  %s208_s27 = scalar_lea.vmem %s449_s3, %s337_s24 }
   0xf   : > { %v339_v0 = vld [vmem:[%s198_s19] sm:$0xff]  }
  0x10   : > { %v340_v2 = vunpack.c.l.bf16 %v339_v0  ;;  %v341_v3 = vunpack.c.h.bf16 %v339_v0 }
  0x12   : > { %v221_v5 = vmul.f32 %v340_v2, %v332_v1  ;;  %v222_v6 = vmul.f32 %v341_v3, %v332_v1 }
  0x14   : > { %v230_v7 = vadd.f32 %v333_v4, %v221_v5  ;;  %v231_v8 = vadd.f32 %v333_v4, %v222_v6 }
  0x16   : > { %v232_v9 = vmax.f32 %v230_v7, 0.0  ;;  %v233_v10 = vmax.f32 %v231_v8, 0.0 }
  0x18   : > { %234 = vst [vmem:[%s208_s27] sm:$0xff] %v232_v9  ;;  %235 = vst [vmem:[%s208_s27 + $0x8] sm:$0xff] %v233_v10 }
  0x19 PF: > { %s13_s14 = sadd.s32 1, %s388_s14   ;;  %s450_s12 = smov %s384_s13 }
  0x1a   : > { %p10_p5 = scmp.ge.s32.totalorder %s13_s14, 4   ;;  %s451_s13 = smov %s453_s15 }
  0x1c   :  { %12 = sbr.rel (!%p10_p5) target bundleno = 2 (0x2), region = 62 }

</bundles_post_ra>
